<compile_context>
chip_gen: v6e
topology: v6e:2x2x1
jax: 0.10.0
libtpu: 0.0.40
codegen_flags: <defaults>
</compile_context>

<pallas_src>
import functools
import itertools

import numpy as np
import jax
import jax.numpy as jnp
from jax.experimental import pallas as pl
from jax.experimental.pallas import tpu as pltpu


def _round_up(x, m):
    return ((x + m - 1) // m) * m


# ----------------------------------------------------------------------------
# Pallas kernel: fused cost-matrix computation for one tile of predictions
# ----------------------------------------------------------------------------
def _cost_kernel(k, ncls, w_point,
                 logits_ref, x_ref, y_ref, onehot_ref, tx_ref, ty_ref, c_ref):
    # --- classification cost: -cost_class * softmax(logits)[:, tgt_ids] ------
    logits = logits_ref[...]                                 # [tn, C]
    m = jnp.max(logits, axis=-1, keepdims=True)
    e = jnp.exp(logits - m)
    prob = e / jnp.sum(e, axis=-1, keepdims=True)            # [tn, C] (exact)

    onehot = onehot_ref[...]                                 # [C, Tp], pre-scaled by -cost_class
    if ncls <= 16:
        # small class count (crowd counting: C=2): unrolled VPU FMA, exact.
        cls_term = prob[:, 0:1] * onehot[0:1, :]
        for c in range(1, ncls):
            cls_term = cls_term + prob[:, c:c + 1] * onehot[c:c + 1, :]
    else:
        cls_term = jnp.dot(prob, onehot, preferred_element_type=jnp.float32)
    # cls_term == cost_class * (-prob[:, tgt_ids])           # [tn, Tp]

    # --- pairwise euclidean distances (point dim = 2) -------------------------
    dx = x_ref[...] - tx_ref[...]                            # [tn,1] - [1,Tp]
    dy = y_ref[...] - ty_ref[...]
    d2 = dx * dx + dy * dy                                   # [tn, Tp]
    dist = jnp.sqrt(d2)

    # --- mean of k nearest targets per prediction (unrolled min-extraction) ---
    # Exact tie handling (mask only the FIRST min each step) matches torch.topk
    # semantics; padded columns sit at ~1.4e6 so they can never be selected.
    tn, tp = dist.shape
    col = jax.lax.broadcasted_iota(jnp.int32, (tn, tp), 1)
    work = dist
    acc = jnp.zeros((tn, 1), jnp.float32)
    for _ in range(k):
        mn = jnp.min(work, axis=-1, keepdims=True)
        acc = acc + mn
        first_idx = jnp.min(jnp.where(work == mn, col, tp),
                            axis=-1, keepdims=True)
        work = jnp.where(col == first_idx, jnp.float32(3e38), work)
    delta = acc / jnp.float32(k)                             # [tn, 1]

    # --- neighborhood-weighted point cost -------------------------------------
    in_nb = dist < delta
    weights = jnp.exp(-d2 / jnp.float32(50.0))               # 2 * 5^2 = 50
    cost_point = jnp.where(in_nb, dist * weights, dist)
    if w_point != 1.0:
        cost_point = jnp.float32(w_point) * cost_point

    c_ref[...] = cost_point + cls_term


# ----------------------------------------------------------------------------
# Host-side assignment (Hungarian). Not a Pallas target — sequential algorithm.
# ----------------------------------------------------------------------------
# TODO(synk): linear_sum_assignment (Hungarian) has no clean Pallas equivalent;
#             it stays on the host (scipy if available, exact brute force
#             fallback for the tiny demo sizes).
def _brute_force_lsa(cost):
    n, m = cost.shape
    if n <= m:
        best_s, best_cols = None, None
        for perm in itertools.permutations(range(m), n):
            s = sum(cost[i, perm[i]] for i in range(n))
            if best_s is None or s < best_s:
                best_s, best_cols = s, perm
        return (np.arange(n, dtype=np.int64),
                np.asarray(best_cols, dtype=np.int64))
    rows_t, cols_t = _brute_force_lsa(cost.T)
    rows, cols = cols_t, rows_t
    order = np.argsort(rows)
    return rows[order].astype(np.int64), cols[order].astype(np.int64)


def _linear_sum_assignment(cost):
    try:
        from scipy.optimize import linear_sum_assignment as lsa
        r, c = lsa(cost)
        return np.asarray(r, np.int64), np.asarray(c, np.int64)
    except Exception:
        return _brute_force_lsa(cost)


# ----------------------------------------------------------------------------
# Matcher wrapper (equivalent of HungarianMatcher_Crowd.forward)
# ----------------------------------------------------------------------------
def hungarian_matcher_crowd(pred_logits, pred_points, targets_labels, targets_points,
                            cost_class=1.0, cost_point=1.0, k_nearest=5):
    bs, nq, ncls = pred_logits.shape
    N = bs * nq

    tgt_ids = jnp.concatenate(targets_labels).astype(jnp.int32)      # [T]
    tgt_pts = jnp.concatenate(targets_points).astype(jnp.float32)    # [T, 2]
    T = int(tgt_pts.shape[0])

    if T == 0:  # degenerate: no ground-truth points anywhere
        C = jnp.zeros((bs, nq, 0), jnp.float32)
        return [(np.zeros(0, np.int64), np.zeros(0, np.int64))
                for _ in range(bs)], C

    # --- lane-dense target axis: pad T up to a multiple of 128 ----------------
    T_pad = _round_up(T, 128)
    pad_t = T_pad - T
    # one-hot pre-scaled by -cost_class: kernel's class term needs no extra op
    onehot = jax.nn.one_hot(tgt_ids, ncls, dtype=jnp.float32).T       # [C, T]
    onehot = onehot * jnp.float32(-float(cost_class))
    onehot = jnp.pad(onehot, ((0, 0), (0, pad_t)))                    # zero cols
    # padded targets get huge coordinates -> can never enter the k-NN mean
    tx = jnp.pad(tgt_pts[:, 0], (0, pad_t), constant_values=1e6).reshape(1, T_pad)
    ty = jnp.pad(tgt_pts[:, 1], (0, pad_t), constant_values=1e6).reshape(1, T_pad)

    # --- flatten + pad predictions, split x/y ---------------------------------
    logits = pred_logits.reshape(N, ncls).astype(jnp.float32)         # [N, C]
    points = pred_points.reshape(N, 2).astype(jnp.float32)            # [N, 2]

    # Tile the prediction axis.  Budget keeps ~16 live [tile, T_pad] f32
    # temporaries (plus double-buffered output) well under the scoped-VMEM
    # default on v5e (16 MiB) / v6e (32 MiB) / v7x (32 of 64 MiB).
    budget = 12 * 1024 * 1024
    tile = budget // (T_pad * 4 * 16)
    tile = max(8, min(512, (tile // 8) * 8))
    tile = min(tile, _round_up(N, 8))
    N_pad = _round_up(N, tile)
    pad_n = N_pad - N

    logits = jnp.pad(logits, ((0, pad_n), (0, 0)))
    points = jnp.pad(points, ((0, pad_n), (0, 0)))
    x = points[:, 0:1]                                                # [N_pad, 1]
    y = points[:, 1:2]                                                # [N_pad, 1]

    k = min(int(k_nearest), T)
    kernel = functools.partial(_cost_kernel, k, int(ncls), float(cost_point))

    C_pad = pl.pallas_call(
        kernel,
        grid=(N_pad // tile,),
        in_specs=[
            pl.BlockSpec((tile, ncls), lambda i: (i, 0)),
            pl.BlockSpec((tile, 1), lambda i: (i, 0)),
            pl.BlockSpec((tile, 1), lambda i: (i, 0)),
            pl.BlockSpec((ncls, T_pad), lambda i: (0, 0)),
            pl.BlockSpec((1, T_pad), lambda i: (0, 0)),
            pl.BlockSpec((1, T_pad), lambda i: (0, 0)),
        ],
        out_specs=pl.BlockSpec((tile, T_pad), lambda i: (i, 0)),
        out_shape=jax.ShapeDtypeStruct((N_pad, T_pad), jnp.float32),
        compiler_params=pltpu.CompilerParams(
            dimension_semantics=("parallel",)),
    )(logits, x, y, onehot, tx, ty)

    # drop padding, restore [B, Q, T]
    C = C_pad[:N, :T].reshape(bs, nq, T)

    # --- split per batch element and solve assignment on host ----------------
    C_np = np.asarray(jax.block_until_ready(C))
    sizes = [int(p.shape[0]) for p in targets_points]
    indices = []
    off = 0
    for i, s in enumerate(sizes):
        r, c = _linear_sum_assignment(C_np[i, :, off:off + s])
        indices.append((r.astype(np.int64), c.astype(np.int64)))
        off += s
    return indices, C


# ----------------------------------------------------------------------------
# Pure-numpy reference for correctness checking of the cost matrix
# ----------------------------------------------------------------------------
def _reference_cost(pred_logits, pred_points, tgt_ids, tgt_points,
                    k_nearest=5, w_class=1.0, w_point=1.0):
    logits = np.asarray(pred_logits, np.float32).reshape(-1, pred_logits.shape[-1])
    e = np.exp(logits - logits.max(-1, keepdims=True))
    prob = e / e.sum(-1, keepdims=True)
    cost_class = -prob[:, np.asarray(tgt_ids)]

    pts = np.asarray(pred_points, np.float32).reshape(-1, 2)
    tp = np.asarray(tgt_points, np.float32)
    diff = pts[:, None, :] - tp[None, :, :]
    dist = np.sqrt((diff ** 2).sum(-1))

    k = min(k_nearest, dist.shape[1])
    nearest = np.sort(dist, axis=1)[:, :k]
    delta = nearest.mean(1, keepdims=True)
    in_nb = dist < delta
    w = np.exp(-dist ** 2 / (2.0 * 5.0 ** 2))
    cost_point = np.where(in_nb, dist * w, dist)
    return w_point * cost_point + w_class * cost_class


# ----------------------------------------------------------------------------
if __name__ == "__main__":
    key = jax.random.PRNGKey(0)
    k1, k2, k3, k4 = jax.random.split(key, 4)

    bs, nq, ncls = 2, 8, 2            # small shapes implied by the forward pass
    pred_logits = jax.random.normal(k1, (bs, nq, ncls), jnp.float32)
    pred_points = jax.random.uniform(k2, (bs, nq, 2), jnp.float32,
                                     minval=0.0, maxval=128.0)

    # targets: batch 0 has 3 GT points, batch 1 has 4 GT points
    targets_points = [
        jax.random.uniform(k3, (3, 2), jnp.float32, minval=0.0, maxval=128.0),
        jax.random.uniform(k4, (4, 2), jnp.float32, minval=0.0, maxval=128.0),
    ]
    targets_labels = [
        jnp.ones((3,), jnp.int32),
        jnp.ones((4,), jnp.int32),
    ]

    indices, C = hungarian_matcher_crowd(pred_logits, pred_points,
                                         targets_labels, targets_points)
    C = jax.block_until_ready(C)

    # correctness check of the Pallas-computed cost matrix
    tgt_ids_np = np.concatenate([np.asarray(l) for l in targets_labels])
    tgt_pts_np = np.concatenate([np.asarray(p) for p in targets_points])
    C_ref = _reference_cost(pred_logits, pred_points, tgt_ids_np, tgt_pts_np)
    np.testing.assert_allclose(np.asarray(C).reshape(C_ref.shape), C_ref,
                               rtol=1e-4, atol=1e-4)

    # sanity check on assignment shapes: min(num_queries, num_targets) matches
    for (i_idx, j_idx), tp in zip(indices, targets_points):
        assert len(i_idx) == len(j_idx) == min(nq, tp.shape[0])

    print("KERNEL_OK")
</pallas_src>

<mosaic_0001>
module attributes {stable_mosaic.version = 11 : i64} {
  func.func @_cost_kernel(%arg0: i32, %arg1: memref<16x2xf32, #tpu.memory_space<vmem>>, %arg2: memref<16x1xf32, #tpu.memory_space<vmem>>, %arg3: memref<16x1xf32, #tpu.memory_space<vmem>>, %arg4: memref<2x128xf32, #tpu.memory_space<vmem>>, %arg5: memref<1x128xf32, #tpu.memory_space<vmem>>, %arg6: memref<1x128xf32, #tpu.memory_space<vmem>>, %arg7: memref<16x128xf32, #tpu.memory_space<vmem>>) attributes {dimension_semantics = [#tpu.dimension_semantics<parallel>], iteration_bounds = array<i64: 1>, scalar_prefetch = 0 : i64, scratch_operands = 0 : i64, tpu.core_type = #tpu.core_type<tc>, window_params = [{transform_indices = @transform_0, window_bounds = array<i64: 16, 2>}, {transform_indices = @transform_1, window_bounds = array<i64: 16, 1>}, {transform_indices = @transform_2, window_bounds = array<i64: 16, 1>}, {pipeline_mode = #tpu.pipeline_mode<synchronous>, transform_indices = @transform_3, window_bounds = array<i64: 2, 128>}, {pipeline_mode = #tpu.pipeline_mode<synchronous>, transform_indices = @transform_4, window_bounds = array<i64: 1, 128>}, {pipeline_mode = #tpu.pipeline_mode<synchronous>, transform_indices = @transform_5, window_bounds = array<i64: 1, 128>}, {transform_indices = @transform_6, window_bounds = array<i64: 16, 128>}]} {
    %c0 = arith.constant 0 : index
    %c0_0 = arith.constant 0 : index
    %0 = vector.load %arg1[%c0, %c0_0] : memref<16x2xf32, #tpu.memory_space<vmem>>, vector<16x2xf32>
    %cst = arith.constant dense<0xFF800000> : vector<16xf32>
    %1 = vector.multi_reduction <maximumf>, %0, %cst [1] : vector<16x2xf32> to vector<16xf32>
    %2 = vector.shape_cast %1 : vector<16xf32> to vector<16x1xf32>
    %3 = vector.broadcast %2 : vector<16x1xf32> to vector<16x2xf32>
    %4 = arith.subf %0, %3 : vector<16x2xf32>
    %5 = math.exp %4 : vector<16x2xf32>
    %cst_1 = arith.constant dense<0.000000e+00> : vector<16xf32>
    %6 = vector.multi_reduction <add>, %5, %cst_1 [1] : vector<16x2xf32> to vector<16xf32>
    %7 = vector.shape_cast %6 : vector<16xf32> to vector<16x1xf32>
    %8 = vector.broadcast %7 : vector<16x1xf32> to vector<16x2xf32>
    %9 = arith.divf %5, %8 : vector<16x2xf32>
    %c0_2 = arith.constant 0 : index
    %c0_3 = arith.constant 0 : index
    %10 = vector.load %arg4[%c0_2, %c0_3] : memref<2x128xf32, #tpu.memory_space<vmem>>, vector<2x128xf32>
    %11 = vector.extract_strided_slice %9 {offsets = [0, 0], sizes = [16, 1], strides = [1, 1]} : vector<16x2xf32> to vector<16x1xf32>
    %12 = vector.extract_strided_slice %10 {offsets = [0, 0], sizes = [1, 128], strides = [1, 1]} : vector<2x128xf32> to vector<1x128xf32>
    %13 = vector.broadcast %11 : vector<16x1xf32> to vector<16x128xf32>
    %14 = vector.broadcast %12 : vector<1x128xf32> to vector<16x128xf32>
    %15 = arith.mulf %13, %14 : vector<16x128xf32>
    %16 = vector.extract_strided_slice %9 {offsets = [0, 1], sizes = [16, 1], strides = [1, 1]} : vector<16x2xf32> to vector<16x1xf32>
    %17 = vector.extract_strided_slice %10 {offsets = [1, 0], sizes = [1, 128], strides = [1, 1]} : vector<2x128xf32> to vector<1x128xf32>
    %18 = vector.broadcast %16 : vector<16x1xf32> to vector<16x128xf32>
    %19 = vector.broadcast %17 : vector<1x128xf32> to vector<16x128xf32>
    %20 = arith.mulf %18, %19 : vector<16x128xf32>
    %21 = arith.addf %15, %20 : vector<16x128xf32>
    %c0_4 = arith.constant 0 : index
    %c0_5 = arith.constant 0 : index
    %22 = vector.load %arg2[%c0_4, %c0_5] : memref<16x1xf32, #tpu.memory_space<vmem>>, vector<16x1xf32>
    %c0_6 = arith.constant 0 : index
    %c0_7 = arith.constant 0 : index
    %23 = vector.load %arg5[%c0_6, %c0_7] : memref<1x128xf32, #tpu.memory_space<vmem>>, vector<1x128xf32>
    %24 = vector.broadcast %22 : vector<16x1xf32> to vector<16x128xf32>
    %25 = vector.broadcast %23 : vector<1x128xf32> to vector<16x128xf32>
    %26 = arith.subf %24, %25 : vector<16x128xf32>
    %c0_8 = arith.constant 0 : index
    %c0_9 = arith.constant 0 : index
    %27 = vector.load %arg3[%c0_8, %c0_9] : memref<16x1xf32, #tpu.memory_space<vmem>>, vector<16x1xf32>
    %c0_10 = arith.constant 0 : index
    %c0_11 = arith.constant 0 : index
    %28 = vector.load %arg6[%c0_10, %c0_11] : memref<1x128xf32, #tpu.memory_space<vmem>>, vector<1x128xf32>
    %29 = vector.broadcast %27 : vector<16x1xf32> to vector<16x128xf32>
    %30 = vector.broadcast %28 : vector<1x128xf32> to vector<16x128xf32>
    %31 = arith.subf %29, %30 : vector<16x128xf32>
    %32 = arith.mulf %26, %26 : vector<16x128xf32>
    %33 = arith.mulf %31, %31 : vector<16x128xf32>
    %34 = arith.addf %32, %33 : vector<16x128xf32>
    %35 = math.sqrt %34 : vector<16x128xf32>
    %36 = tpu.iota {dimensions = array<i32: 1>} : vector<16x128xi32>
    %cst_12 = arith.constant 0.000000e+00 : f32
    %37 = vector.broadcast %cst_12 : f32 to vector<16x1xf32>
    %cst_13 = arith.constant dense<0x7F800000> : vector<16xf32>
    %38 = vector.multi_reduction <minimumf>, %35, %cst_13 [1] : vector<16x128xf32> to vector<16xf32>
    %39 = vector.shape_cast %38 : vector<16xf32> to vector<16x1xf32>
    %40 = arith.addf %37, %39 : vector<16x1xf32>
    %41 = vector.broadcast %39 : vector<16x1xf32> to vector<16x128xf32>
    %42 = arith.cmpf oeq, %35, %41 : vector<16x128xf32>
    %c128_i32 = arith.constant 128 : i32
    %43 = vector.broadcast %c128_i32 : i32 to vector<16x128xi32>
    %44 = arith.select %42, %36, %43 : vector<16x128xi1>, vector<16x128xi32>
    %cst_14 = arith.constant dense<2147483647> : vector<16xi32>
    %45 = vector.multi_reduction <minsi>, %44, %cst_14 [1] : vector<16x128xi32> to vector<16xi32>
    %46 = vector.shape_cast %45 : vector<16xi32> to vector<16x1xi32>
    %47 = vector.broadcast %46 : vector<16x1xi32> to vector<16x128xi32>
    %48 = arith.cmpi eq, %36, %47 : vector<16x128xi32>
    %cst_15 = arith.constant 3.000000e+38 : f32
    %49 = vector.broadcast %cst_15 : f32 to vector<16x128xf32>
    %50 = arith.select %48, %49, %35 : vector<16x128xi1>, vector<16x128xf32>
    %cst_16 = arith.constant dense<0x7F800000> : vector<16xf32>
    %51 = vector.multi_reduction <minimumf>, %50, %cst_16 [1] : vector<16x128xf32> to vector<16xf32>
    %52 = vector.shape_cast %51 : vector<16xf32> to vector<16x1xf32>
    %53 = arith.addf %40, %52 : vector<16x1xf32>
    %54 = vector.broadcast %52 : vector<16x1xf32> to vector<16x128xf32>
    %55 = arith.cmpf oeq, %50, %54 : vector<16x128xf32>
    %c128_i32_17 = arith.constant 128 : i32
    %56 = vector.broadcast %c128_i32_17 : i32 to vector<16x128xi32>
    %57 = arith.select %55, %36, %56 : vector<16x128xi1>, vector<16x128xi32>
    %cst_18 = arith.constant dense<2147483647> : vector<16xi32>
    %58 = vector.multi_reduction <minsi>, %57, %cst_18 [1] : vector<16x128xi32> to vector<16xi32>
    %59 = vector.shape_cast %58 : vector<16xi32> to vector<16x1xi32>
    %60 = vector.broadcast %59 : vector<16x1xi32> to vector<16x128xi32>
    %61 = arith.cmpi eq, %36, %60 : vector<16x128xi32>
    %cst_19 = arith.constant 3.000000e+38 : f32
    %62 = vector.broadcast %cst_19 : f32 to vector<16x128xf32>
    %63 = arith.select %61, %62, %50 : vector<16x128xi1>, vector<16x128xf32>
    %cst_20 = arith.constant dense<0x7F800000> : vector<16xf32>
    %64 = vector.multi_reduction <minimumf>, %63, %cst_20 [1] : vector<16x128xf32> to vector<16xf32>
    %65 = vector.shape_cast %64 : vector<16xf32> to vector<16x1xf32>
    %66 = arith.addf %53, %65 : vector<16x1xf32>
    %67 = vector.broadcast %65 : vector<16x1xf32> to vector<16x128xf32>
    %68 = arith.cmpf oeq, %63, %67 : vector<16x128xf32>
    %c128_i32_21 = arith.constant 128 : i32
    %69 = vector.broadcast %c128_i32_21 : i32 to vector<16x128xi32>
    %70 = arith.select %68, %36, %69 : vector<16x128xi1>, vector<16x128xi32>
    %cst_22 = arith.constant dense<2147483647> : vector<16xi32>
    %71 = vector.multi_reduction <minsi>, %70, %cst_22 [1] : vector<16x128xi32> to vector<16xi32>
    %72 = vector.shape_cast %71 : vector<16xi32> to vector<16x1xi32>
    %73 = vector.broadcast %72 : vector<16x1xi32> to vector<16x128xi32>
    %74 = arith.cmpi eq, %36, %73 : vector<16x128xi32>
    %cst_23 = arith.constant 3.000000e+38 : f32
    %75 = vector.broadcast %cst_23 : f32 to vector<16x128xf32>
    %76 = arith.select %74, %75, %63 : vector<16x128xi1>, vector<16x128xf32>
    %cst_24 = arith.constant dense<0x7F800000> : vector<16xf32>
    %77 = vector.multi_reduction <minimumf>, %76, %cst_24 [1] : vector<16x128xf32> to vector<16xf32>
    %78 = vector.shape_cast %77 : vector<16xf32> to vector<16x1xf32>
    %79 = arith.addf %66, %78 : vector<16x1xf32>
    %80 = vector.broadcast %78 : vector<16x1xf32> to vector<16x128xf32>
    %81 = arith.cmpf oeq, %76, %80 : vector<16x128xf32>
    %c128_i32_25 = arith.constant 128 : i32
    %82 = vector.broadcast %c128_i32_25 : i32 to vector<16x128xi32>
    %83 = arith.select %81, %36, %82 : vector<16x128xi1>, vector<16x128xi32>
    %cst_26 = arith.constant dense<2147483647> : vector<16xi32>
    %84 = vector.multi_reduction <minsi>, %83, %cst_26 [1] : vector<16x128xi32> to vector<16xi32>
    %85 = vector.shape_cast %84 : vector<16xi32> to vector<16x1xi32>
    %86 = vector.broadcast %85 : vector<16x1xi32> to vector<16x128xi32>
    %87 = arith.cmpi eq, %36, %86 : vector<16x128xi32>
    %cst_27 = arith.constant 3.000000e+38 : f32
    %88 = vector.broadcast %cst_27 : f32 to vector<16x128xf32>
    %89 = arith.select %87, %88, %76 : vector<16x128xi1>, vector<16x128xf32>
    %cst_28 = arith.constant dense<0x7F800000> : vector<16xf32>
    %90 = vector.multi_reduction <minimumf>, %89, %cst_28 [1] : vector<16x128xf32> to vector<16xf32>
    %91 = vector.shape_cast %90 : vector<16xf32> to vector<16x1xf32>
    %92 = arith.addf %79, %91 : vector<16x1xf32>
    %cst_29 = arith.constant 5.000000e+00 : f32
    %93 = vector.broadcast %cst_29 : f32 to vector<16x1xf32>
    %94 = arith.divf %92, %93 : vector<16x1xf32>
    %95 = vector.broadcast %94 : vector<16x1xf32> to vector<16x128xf32>
    %96 = arith.cmpf olt, %35, %95 : vector<16x128xf32>
    %cst_30 = arith.constant 0.000000e+00 : f32
    %97 = vector.broadcast %cst_30 : f32 to vector<16x128xf32>
    %98 = arith.subf %97, %34 : vector<16x128xf32>
    %cst_31 = arith.constant 5.000000e+01 : f32
    %99 = vector.broadcast %cst_31 : f32 to vector<16x128xf32>
    %100 = arith.divf %98, %99 : vector<16x128xf32>
    %101 = math.exp %100 : vector<16x128xf32>
    %102 = arith.mulf %35, %101 : vector<16x128xf32>
    %103 = arith.select %96, %102, %35 : vector<16x128xi1>, vector<16x128xf32>
    %104 = arith.addf %103, %21 : vector<16x128xf32>
    %c0_32 = arith.constant 0 : index
    %c0_33 = arith.constant 0 : index
    %105 = vector.load %arg7[%c0_32, %c0_33] : memref<16x128xf32, #tpu.memory_space<vmem>>, vector<16x128xf32>
    tpu.vector_store %arg7[%c0_32, %c0_33], %104 {strides = array<i32>} : memref<16x128xf32, #tpu.memory_space<vmem>>, vector<16x128xf32>,
    return
  }
  func.func @transform_0(%arg0: i32) -> (i32, i32) {
    %c0_i32 = arith.constant 0 : i32
    %c0_i32_0 = arith.constant 0 : i32
    return %arg0, %c0_i32 : i32, i32
  }
  func.func @transform_1(%arg0: i32) -> (i32, i32) {
    %c0_i32 = arith.constant 0 : i32
    %c0_i32_0 = arith.constant 0 : i32
    return %arg0, %c0_i32 : i32, i32
  }
  func.func @transform_2(%arg0: i32) -> (i32, i32) {
    %c0_i32 = arith.constant 0 : i32
    %c0_i32_0 = arith.constant 0 : i32
    return %arg0, %c0_i32 : i32, i32
  }
  func.func @transform_3(%arg0: i32) -> (i32, i32) {
    %c0_i32 = arith.constant 0 : i32
    %c0_i32_0 = arith.constant 0 : i32
    %c0_i32_1 = arith.constant 0 : i32
    return %c0_i32, %c0_i32_0 : i32, i32
  }
  func.func @transform_4(%arg0: i32) -> (i32, i32) {
    %c0_i32 = arith.constant 0 : i32
    %c0_i32_0 = arith.constant 0 : i32
    %c0_i32_1 = arith.constant 0 : i32
    return %c0_i32, %c0_i32_0 : i32, i32
  }
  func.func @transform_5(%arg0: i32) -> (i32, i32) {
    %c0_i32 = arith.constant 0 : i32
    %c0_i32_0 = arith.constant 0 : i32
    %c0_i32_1 = arith.constant 0 : i32
    return %c0_i32, %c0_i32_0 : i32, i32
  }
  func.func @transform_6(%arg0: i32) -> (i32, i32) {
    %c0_i32 = arith.constant 0 : i32
    %c0_i32_0 = arith.constant 0 : i32
    return %arg0, %c0_i32 : i32, i32
  }
}

</mosaic_0001>

<bundles_post_ra>
// kernel: tpu_custom_call.1
= control target key start
LH: loop header
LB: loop body
LE: loop exit
PB: predicated region body
PF: predicated region fallthrough
CT: control target
= control target key end

     0   :  { %v406_v2 = vmov 0   ;;  %s576_s0 = inlined_call_operand.vmem [shape: f32[16,2], index: 0, kind: input, shape index: {}]   ;;  %s577_s1 = inlined_call_operand.vmem [shape: f32[16,1], index: 1, kind: input, shape index: {}]   ;;  %s578_s2 = inlined_call_operand.vmem [shape: f32[16,1], index: 2, kind: input, shape index: {}]   ;;  %s579_s3 = inlined_call_operand.vmem [shape: f32[2,128], index: 3, kind: input, shape index: {}]   ;;  %s580_s4 = inlined_call_operand.vmem [shape: f32[1,128], index: 4, kind: input, shape index: {}]   ;;  %s581_s5 = inlined_call_operand.vmem [shape: f32[1,128], index: 5, kind: input, shape index: {}]   ;;  %s582_s6 = inlined_call_operand.hbm [shape: f32[16,128], index: 6, kind: output, shape index: {}]  }
   0x1   :  { %v103_v0 = vld [vmem:[%s578_s2] sm:$0xff]  ;;  %366 = vset.pattern.permute.xlu1 %v406_v2  ;;  %365 = vset.pattern.permute.xlu0 %v406_v2 }
   0x2   :  { %v82_v1 = vld [vmem:[%s577_s1] sm:$0xff]  ;;  %108 = vperm.xlu1 %366, %v103_v0  }
   0x3   :  { %87 = vperm.xlu0 %365, %v82_v1  }
   0x4   :  { %11 = vsyncpa [#allocation3], 0  ;;  %v104_v3 = vld [vmem:[%s578_s2 + $0x8] sm:$0xff]  ;;  %v359_v5 = vld [vmem:[%s581_s5] ss:$0 sm:$0xff]  ;;  %v60_v31 = vlaneseq }
   0x5   :  { %v83_v4 = vld [vmem:[%s577_s1 + $0x8] sm:$0xff]  ;;  %v358_v6 = vld [vmem:[%s580_s4] ss:$0 sm:$0xff] }
   0x6   :  { %113 = vperm.xlu1 %366, %v104_v3   ;;  %v487_v32 = vand.u32 127, %v60_v31 }
   0x7   :  { %92 = vperm.xlu0 %365, %v83_v4  }
  0x7d   :  { %v109_v7 = vpop.permute.xlu1 %108 }
  0x7e   :  { %v88_v8 = vpop.permute.xlu0 %87  ;;  %v122_v9 = vsub.f32 %v109_v7, %v359_v5 }
  0x7f   :  { %v101_v10 = vsub.f32 %v88_v8, %v358_v6 }
  0x80   :  { %v126_v11 = vmul.f32 %v122_v9, %v122_v9 }
  0x81   :  { %v124_v12 = vmul.f32 %v101_v10, %v101_v10  ;;  %v114_v13 = vpop.permute.xlu1 %113 }
  0x82   :  { %v93_v14 = vpop.permute.xlu0 %92  ;;  %v123_v16 = vsub.f32 %v114_v13, %v359_v5 }
  0x83   :  { %v464_v15 = vadd.f32 %v126_v11, %v124_v12  ;;  %v102_v17 = vsub.f32 %v93_v14, %v358_v6 }
  0x84   :  { %v127_v18 = vmul.f32 %v123_v16, %v123_v16 }
  0x85   :  { %368 = vrsqrt.f32 %v464_v15  ;;  %v125_v19 = vmul.f32 %v102_v17, %v102_v17  ;;  %vm132_vm0 = vcmp.eq.f32.partialorder %v464_v15, inf  ;;  %v135_v23 = vand.u32 2147483648, %v464_v15 }
  0x86   :  { %vm134_vm1 = vcmp.eq.f32.partialorder %v464_v15, 0.0 }
  0x87   :  { %v467_v20 = vadd.f32 %v127_v18, %v125_v19 }
  0x89   :  { %370 = vrsqrt.f32 %v467_v20  ;;  %vm139_vm2 = vcmp.eq.f32.partialorder %v467_v20, inf  ;;  %v142_v28 = vand.u32 2147483648, %v467_v20  ;;  %vm141_vm3 = vcmp.eq.f32.partialorder %v467_v20, 0.0 }
  0x92   :  { %v369_v21 = vpop.eup %368 }
  0x93   :  { %v131_v22 = vmul.f32 %v369_v21, %v464_v15 }
  0x95   :  { %v133_v24 = vsel %vm132_vm0, %v464_v15, %v131_v22 }
  0x96   :  { %v371_v25 = vpop.eup %370  ;;  %v475_v26 = vsel %vm134_vm1, %v135_v23, %v133_v24 }
  0x97   :  { %146 = vmin.xlane.f32.xlu0 %v475_v26  ;;  %v138_v27 = vmul.f32 %v371_v25, %v467_v20 }
  0x99   :  { %v140_v29 = vsel %vm139_vm2, %v467_v20, %v138_v27 }
  0x9a   :  { %v483_v30 = vsel %vm141_vm3, %v142_v28, %v140_v29 }
  0x9b   :  { %148 = vmin.xlane.f32.xlu1 %v483_v30 }
 0x120   :  { %v489_v33 = vpop.xlane.xlu0 %146 }
 0x121   :  { %vm152_vm4 = vcmp.eq.f32.partialorder %v475_v26, %v489_v33 }
 0x122   :  { %v154_v34 = vsel %vm152_vm4, %v487_v32, 128 }
 0x123   :  { %v157_v35 = vshra.s32 %v154_v34, 16  ;;  %v156_v41 = vand.u32 65535, %v154_v34 }
 0x124   :  { %v494_v36 = vpop.xlane.xlu1 %148 }
 0x125   :  { %vm153_vm5 = vcmp.eq.f32.partialorder %v483_v30, %v494_v36  ;;  %v159_v37 = vcvt.s32.f32 %v157_v35  ;;  %v158_v43 = vcvt.s32.f32 %v156_v41 }
 0x126   :  { %v155_v38 = vsel %vm153_vm5, %v487_v32, 128  ;;  %vm26_vm5 = vcmask 15360  }
 0x127   :  { %160 = vmin.xlane.f32.xlu0 %v159_v37  ;;  %v171_v39 = vshra.s32 %v155_v38, 16  ;;  %v170_v44 = vand.u32 65535, %v155_v38 }
 0x129   :  { %v173_v40 = vcvt.s32.f32 %v171_v39  ;;  %v172_v47 = vcvt.s32.f32 %v170_v44 }
 0x12b   :  { %174 = vmin.xlane.f32.xlu0 %v173_v40 }
 0x1b0   :  { %v161_v42 = vpop.xlane.xlu0 %160 }
 0x1b1   :  { %vm162_vm6 = vcmp.eq.f32.partialorder %v159_v37, %v161_v42  ;;  %v167_v49 = vcvt.f32.s32 %v161_v42 }
 0x1b2   :  { %v163_v45 = vsel %vm162_vm6, %v158_v43, inf }
 0x1b3   :  { %164 = vmin.xlane.f32.xlu1 %v163_v45  ;;  %v168_v51 = vshll.u32 %v167_v49, 16 }
 0x1b4   :  { %v175_v46 = vpop.xlane.xlu0 %174 }
 0x1b5   :  { %vm176_vm7 = vcmp.eq.f32.partialorder %v173_v40, %v175_v46  ;;  %v181_v52 = vcvt.f32.s32 %v175_v46 }
 0x1b6   :  { %v177_v48 = vsel %vm176_vm7, %v172_v47, inf }
 0x1b7   :  { %178 = vmin.xlane.f32.xlu0 %v177_v48  ;;  %v182_v56 = vshll.u32 %v181_v52, 16 }
 0x23c   :  { %v165_v50 = vpop.xlane.xlu1 %164 }
 0x23d   :  { %v166_v53 = vcvt.f32.s32 %v165_v50 }
 0x23f   :  { %v169_v54 = vadd.s32 %v168_v51, %v166_v53 }
 0x240   :  { %v179_v55 = vpop.xlane.xlu0 %178 }
 0x241   :  { %v180_v57 = vcvt.f32.s32 %v179_v55  ;;  %vm184_vm8 = vcmp.eq.s32.totalorder %v487_v32, %v169_v54 }
 0x242   :  { %v186_v58 = vsel %vm184_vm8, 3e+38, %v475_v26 }
 0x243   :  { %v183_v59 = vadd.s32 %v182_v56, %v180_v57  ;;  %188 = vmin.xlane.f32.xlu1 %v186_v58 }
 0x245   :  { %vm185_vm9 = vcmp.eq.s32.totalorder %v487_v32, %v183_v59 }
 0x246   :  { %v187_v60 = vsel %vm185_vm9, 3e+38, %v483_v30 }
 0x247   :  { %190 = vmin.xlane.f32.xlu0 %v187_v60 }
 0x2cc   :  { %v503_v61 = vpop.xlane.xlu1 %188 }
 0x2cd   :  { %vm194_vm10 = vcmp.eq.f32.partialorder %v186_v58, %v503_v61 }
 0x2ce   :  { %v196_v62 = vsel %vm194_vm10, %v487_v32, 128 }
 0x2cf   :  { %v199_v63 = vshra.s32 %v196_v62, 16  ;;  %v198_v5 = vand.u32 65535, %v196_v62 }
 0x2d0   :  { %v507_v0 = vpop.xlane.xlu0 %190 }
 0x2d1   :  { %vm195_vm11 = vcmp.eq.f32.partialorder %v187_v60, %v507_v0  ;;  %v201_v1 = vcvt.s32.f32 %v199_v63  ;;  %v200_v7 = vcvt.s32.f32 %v198_v5  ;;  %v25_v63 = vld [vmem:[%s576_s0 + $0x8] sm:$0xff] }
 0x2d2   :  { %v197_v2 = vsel %vm195_vm11, %v487_v32, 128 }
 0x2d3   :  { %202 = vmin.xlane.f32.xlu1 %v201_v1  ;;  %v213_v3 = vshra.s32 %v197_v2, 16  ;;  %v212_v8 = vand.u32 65535, %v197_v2  ;;  %v30_v2 = vsel %vm26_vm5, %v25_v63, -inf }
 0x2d5   :  { %v215_v4 = vcvt.s32.f32 %v213_v3  ;;  %v214_v11 = vcvt.s32.f32 %v212_v8 }
 0x2d7   :  { %216 = vmin.xlane.f32.xlu0 %v215_v4 }
 0x35c   :  { %v203_v6 = vpop.xlane.xlu1 %202 }
 0x35d   :  { %vm204_vm12 = vcmp.eq.f32.partialorder %v201_v1, %v203_v6  ;;  %v209_v13 = vcvt.f32.s32 %v203_v6 }
 0x35e   :  { %v205_v9 = vsel %vm204_vm12, %v200_v7, inf }
 0x35f   :  { %206 = vmin.xlane.f32.xlu1 %v205_v9  ;;  %v210_v16 = vshll.u32 %v209_v13, 16 }
 0x360   :  { %v217_v10 = vpop.xlane.xlu0 %216 }
 0x361   :  { %vm218_vm13 = vcmp.eq.f32.partialorder %v215_v4, %v217_v10  ;;  %v223_v17 = vcvt.f32.s32 %v217_v10 }
 0x362   :  { %v219_v12 = vsel %vm218_vm13, %v214_v11, inf }
 0x363   :  { %220 = vmin.xlane.f32.xlu0 %v219_v12  ;;  %v224_v22 = vshll.u32 %v223_v17, 16 }
 0x3e8   :  { %v207_v14 = vpop.xlane.xlu1 %206 }
 0x3e9   :  { %v208_v18 = vcvt.f32.s32 %v207_v14 }
 0x3eb   :  { %v211_v19 = vadd.s32 %v210_v16, %v208_v18 }
 0x3ec   :  { %v221_v21 = vpop.xlane.xlu0 %220 }
 0x3ed   :  { %v222_v23 = vcvt.f32.s32 %v221_v21  ;;  %vm226_vm14 = vcmp.eq.s32.totalorder %v487_v32, %v211_v19 }
 0x3ee   :  { %v228_v24 = vsel %vm226_vm14, 3e+38, %v186_v58  ;;  %v24_v58 = vld [vmem:[%s576_s0] sm:$0xff] }
 0x3ef   :  { %v225_v25 = vadd.s32 %v224_v22, %v222_v23  ;;  %230 = vmin.xlane.f32.xlu1 %v228_v24  ;;  %v27_v62 = vsel %vm26_vm5, %v24_v58, -inf }
 0x3f1   :  { %vm227_vm15 = vcmp.eq.s32.totalorder %v487_v32, %v225_v25 }
 0x3f2   :  { %v229_v27 = vsel %vm227_vm15, 3e+38, %v187_v60 }
 0x3f3   :  { %232 = vmin.xlane.f32.xlu0 %v229_v27 }
 0x478   :  { %v513_v28 = vpop.xlane.xlu1 %230 }
 0x479   :  { %vm236_vm0 = vcmp.eq.f32.partialorder %v228_v24, %v513_v28 }
 0x47a   :  { %v238_v29 = vsel %vm236_vm0, %v487_v32, 128 }
 0x47b   :  { %v241_v34 = vshra.s32 %v238_v29, 16  ;;  %v240_v41 = vand.u32 65535, %v238_v29 }
 0x47c   :  { %v517_v35 = vpop.xlane.xlu0 %232 }
 0x47d   :  { %vm237_vm1 = vcmp.eq.f32.partialorder %v229_v27, %v517_v35  ;;  %v243_v37 = vcvt.s32.f32 %v241_v34  ;;  %v242_v43 = vcvt.s32.f32 %v240_v41 }
 0x47e   :  { %v239_v38 = vsel %vm237_vm1, %v487_v32, 128 }
 0x47f   :  { %244 = vmin.xlane.f32.xlu1 %v243_v37  ;;  %v255_v39 = vshra.s32 %v239_v38, 16  ;;  %v254_v44 = vand.u32 65535, %v239_v38 }
 0x481   :  { %v257_v40 = vcvt.s32.f32 %v255_v39  ;;  %v256_v47 = vcvt.s32.f32 %v254_v44 }
 0x483   :  { %258 = vmin.xlane.f32.xlu0 %v257_v40 }
 0x508   :  { %v245_v42 = vpop.xlane.xlu1 %244 }
 0x509   :  { %vm246_vm2 = vcmp.eq.f32.partialorder %v243_v37, %v245_v42  ;;  %v251_v49 = vcvt.f32.s32 %v245_v42  ;;  %v407_v42 = vmov 1  }
 0x50a   :  { %v247_v45 = vsel %vm246_vm2, %v242_v43, inf }
 0x50b   :  { %248 = vmin.xlane.f32.xlu1 %v247_v45  ;;  %v252_v51 = vshll.u32 %v251_v49, 16 }
 0x50c   :  { %v259_v46 = vpop.xlane.xlu0 %258 }
 0x50d   :  { %vm260_vm3 = vcmp.eq.f32.partialorder %v257_v40, %v259_v46  ;;  %v265_v52 = vcvt.f32.s32 %v259_v46 }
 0x50e   :  { %v261_v48 = vsel %vm260_vm3, %v256_v47, inf }
 0x50f   :  { %262 = vmin.xlane.f32.xlu0 %v261_v48  ;;  %v266_v56 = vshll.u32 %v265_v52, 16 }
 0x594   :  { %v249_v50 = vpop.xlane.xlu1 %248 }
 0x595   :  { %v250_v53 = vcvt.f32.s32 %v249_v50 }
 0x597   :  { %v253_v54 = vadd.s32 %v252_v51, %v250_v53 }
 0x598   :  { %v263_v55 = vpop.xlane.xlu0 %262 }
 0x599   :  { %v264_v57 = vcvt.f32.s32 %v263_v55  ;;  %vm268_vm4 = vcmp.eq.s32.totalorder %v487_v32, %v253_v54 }
 0x59a   :  { %v525_v59 = vsel %vm268_vm4, 3e+38, %v228_v24 }
 0x59b   :  { %v267_v60 = vadd.s32 %v266_v56, %v264_v57  ;;  %272 = vmin.xlane.f32.xlu1 %v525_v59 }
 0x59d   :  { %vm269_vm6 = vcmp.eq.s32.totalorder %v487_v32, %v267_v60 }
 0x59e   :  { %v533_v1 = vsel %vm269_vm6, 3e+38, %v229_v27 }
 0x59f   :  { %274 = vmin.xlane.f32.xlu0 %v533_v1  ;;  %28 = vmax.xlane.f32.xlu1 %v27_v62  ;;  %v326_v62 = vsub.f32 0.0, %v467_v20  ;;  %v193_v20 = vadd.f32 %v507_v0, %v494_v36 }
 0x5a3   :  { %31 = vmax.xlane.f32.xlu0 %v30_v2 }
 0x624   :  { %v537_v3 = vpop.xlane.xlu1 %272 }
 0x625   :  { %vm278_vm7 = vcmp.eq.f32.partialorder %v525_v59, %v537_v3 }
 0x626   :  { %v280_v4 = vsel %vm278_vm7, %v487_v32, 128 }
 0x627   :  { %v283_v5 = vshra.s32 %v280_v4, 16  ;;  %v282_v23 = vand.u32 65535, %v280_v4 }
 0x628   :  { %v542_v6 = vpop.xlane.xlu0 %274  ;;  %v29_v7 = vpop.xlane.xlu1 %28 }
 0x629   :  { %vm279_vm8 = vcmp.eq.f32.partialorder %v533_v1, %v542_v6  ;;  %v33_v8 = vsub.f32 %v24_v58, %v29_v7  ;;  %v285_v9 = vcvt.s32.f32 %v283_v5  ;;  %v284_v25 = vcvt.s32.f32 %v282_v23 }
 0x62a   :  { %v281_v10 = vsel %vm279_vm8, %v487_v32, 128  ;;  %v325_v58 = vsub.f32 0.0, %v464_v15  ;;  %v49_v15 = vld [vmem:[%s579_s3] sm:$0x3]  ;;  %s408_s3 = smov [#allocation2]  }
 0x62b   :  { %v35_v11 = vmul.f32 1.442695, %v33_v8  ;;  %286 = vmin.xlane.f32.xlu1 %v285_v9  ;;  %v297_v12 = vshra.s32 %v281_v10, 16  ;;  %v296_v27 = vand.u32 65535, %v281_v10  ;;  %s347_s10 = sshll.u32 %s408_s3, 4  ;;  %s348_s10 = int_to_ptr.vmem [resolvable:$true] %s347_s10 }
 0x62c   :  { %v32_v13 = vpop.xlane.xlu0 %31  ;;  %v328_v60 = vmul.f32 0.02, %v325_v58  ;;  %s384_s11 = scalar_lea.vmem %s348_s10, 256  ;;  %p389_p1 = scmp.lt.s32.totalorder %s348_s10, %s348_s10 }
 0x62d   :  { %372 = vpow2.f32 %v35_v11  ;;  %v34_v14 = vsub.f32 %v25_v63, %v32_v13  ;;  %v299_v16 = vcvt.s32.f32 %v297_v12  ;;  %v298_v37 = vcvt.s32.f32 %v296_v27  ;;  %p385_p0 = scmp.ne.s32.totalorder %s348_s10, %s384_s11  ;;  %p390_p2 = scmp.lt.s32.totalorder %s384_s11, %s384_s11 }
 0x62e   :  { %v330_v63 = vmul.f32 1.442695, %v328_v60 }
 0x62f   :  { %v37_v17 = vmul.f32 1.442695, %v34_v14  ;;  %300 = vmin.xlane.f32.xlu0 %v299_v16  ;;  %p391_p3 = por %p390_p2, %p389_p1 }
 0x631   :  { %374 = vpow2.f32 %v37_v17  ;;  %p392_p4 = pnand %p391_p3, %p385_p0 }
 0x63a   :  { %v373_v18 = vpop.eup %372 }
 0x63b   :  { %v39_v19 = vsel %vm26_vm5, %v373_v18, 0.0 }
 0x63c   :  { %40 = vadd.xlane.f32.xlu1 %v39_v19 }
 0x63e   :  { %v375_v21 = vpop.eup %374 }
 0x63f   :  { %v42_v22 = vsel %vm26_vm5, %v375_v21, 0.0 }
 0x640   :  { %43 = vadd.xlane.f32.xlu0 %v42_v22 }
 0x6b4   :  { %v287_v24 = vpop.xlane.xlu1 %286 }
 0x6b5   :  { %vm288_vm9 = vcmp.eq.f32.partialorder %v285_v9, %v287_v24  ;;  %v293_v43 = vcvt.f32.s32 %v287_v24 }
 0x6b6   :  { %v289_v29 = vsel %vm288_vm9, %v284_v25, inf }
 0x6b7   :  { %290 = vmin.xlane.f32.xlu1 %v289_v29  ;;  %v294_v46 = vshll.u32 %v293_v43, 16 }
 0x6b8   :  { %v301_v34 = vpop.xlane.xlu0 %300 }
 0x6b9   :  { %vm302_vm10 = vcmp.eq.f32.partialorder %v299_v16, %v301_v34  ;;  %v307_v47 = vcvt.f32.s32 %v301_v34 }
 0x6ba   :  { %v303_v38 = vsel %vm302_vm10, %v298_v37, inf }
 0x6bb   :  { %304 = vmin.xlane.f32.xlu0 %v303_v38  ;;  %v308_v51 = vshll.u32 %v307_v47, 16 }
 0x6c5   :  { %v41_v39 = vpop.xlane.xlu1 %40 }
 0x6c6   :  { %376 = vrcp.f32 %v41_v39 }
 0x6c9   :  { %v44_v44 = vpop.xlane.xlu0 %43 }
 0x6ca   :  { %378 = vrcp.f32 %v44_v44 }
 0x6cb   :  { %380 = vpow2.f32 %v330_v63 }
 0x6d3   :  { %v377_v40 = vpop.eup %376 }
 0x6d4   :  { %v46_v41 = vmul.f32 %v377_v40, %v373_v18 }
 0x6d6   :  { %52 = vperm.xlu1 %366, %v46_v41  }
 0x6d7   :  { %v379_v56 = vpop.eup %378 }
 0x6d8   :  { %v48_v57 = vmul.f32 %v379_v56, %v375_v21  ;;  %v381_v11 = vpop.eup %380 }
 0x6d9   :  { %v334_v14 = vmul.f32 %v381_v11, %v475_v26 }
 0x6da   :  { %367 = vset.pattern.permute.xlu1 %v407_v42 }
 0x740   :  { %v291_v45 = vpop.xlane.xlu1 %290 }
 0x741   :  { %v292_v48 = vcvt.f32.s32 %v291_v45 }
 0x743   :  { %v295_v49 = vadd.s32 %v294_v46, %v292_v48 }
 0x744   :  { %v305_v50 = vpop.xlane.xlu0 %304 }
 0x745   :  { %v306_v52 = vcvt.f32.s32 %v305_v50  ;;  %vm310_vm11 = vcmp.eq.s32.totalorder %v487_v32, %v295_v49 }
 0x746   :  { %v312_v53 = vsel %vm310_vm11, 3e+38, %v525_v59  ;;  %v329_v59 = vmul.f32 0.02, %v326_v62 }
 0x747   :  { %v309_v54 = vadd.s32 %v308_v51, %v306_v52  ;;  %314 = vmin.xlane.f32.xlu1 %v312_v53 }
 0x748   :  { %v332_v2 = vmul.f32 1.442695, %v329_v59 }
 0x749   :  { %vm311_vm12 = vcmp.eq.s32.totalorder %v487_v32, %v309_v54  ;;  %v61_v32 = vshrl.u32 %v60_v31, 7  ;;  %v235_v31 = vadd.f32 %v517_v35, %v193_v20 }
 0x74a   :  { %v313_v55 = vsel %vm311_vm12, 3e+38, %v533_v1  ;;  %382 = vpow2.f32 %v332_v2  ;;  %v192_v1 = vadd.f32 %v503_v61, %v489_v33 }
 0x74b   :  { %316 = vmin.xlane.f32.xlu0 %v313_v55  ;;  %v62_v7 = vsub.s32 0, %v61_v32  ;;  %v76_v8 = vsub.s32 1, %v61_v32 }
 0x74c   :  { %v234_v5 = vadd.f32 %v513_v28, %v192_v1  ;;  %v277_v28 = vadd.f32 %v542_v6, %v235_v31 }
 0x74d   :  { %v63_v12 = vrot.slane %v49_v15, %v62_v7  ;;  %v77_v61 = vrot.slane %v49_v15, %v76_v8 }
 0x74e   :  { %v276_v9 = vadd.f32 %v537_v3, %v234_v5 }
 0x751   :  { %v53_v4 = vpop.permute.xlu1 %52 }
 0x752   :  { %v64_v19 = vmul.f32 %v63_v12, %v53_v4 }
 0x757   :  { %v383_v18 = vpop.eup %382 }
 0x758   :  { %67 = vperm.xlu1 %367, %v46_v41   ;;  %v335_v22 = vmul.f32 %v383_v18, %v483_v30 }
 0x75c   :  { %71 = vperm.xlu1 %367, %v48_v57  }
 0x761   :  { %57 = vperm.xlu0 %365, %v48_v57  }
 0x7d0   :  { %v315_v10 = vpop.xlane.xlu1 %314 }
 0x7d1   :  { %v318_v33 = vadd.f32 %v315_v10, %v276_v9 }
 0x7d3   :  { %v321_v13 = vmul.f32 0.2, %v318_v33 }
 0x7d4   :  { %v317_v16 = vpop.xlane.xlu0 %316  ;;  %v68_v17 = vpop.permute.xlu1 %67 }
 0x7d5   :  { %vm323_vm13 = vcmp.lt.f32.partialorder %v475_v26, %v321_v13  ;;  %v319_v36 = vadd.f32 %v317_v16, %v277_v28  ;;  %v78_v0 = vmul.f32 %v77_v61, %v68_v17 }
 0x7d6   :  { %v336_v3 = vsel %vm323_vm13, %v334_v14, %v475_v26 }
 0x7d7   :  { %v322_v21 = vmul.f32 0.2, %v319_v36  ;;  %v80_v35 = vadd.f32 %v78_v0, %v64_v19 }
 0x7d8   :  { %v72_v24 = vpop.permute.xlu1 %71 }
 0x7d9   :  { %vm324_vm14 = vcmp.lt.f32.partialorder %v483_v30, %v322_v21  ;;  %v338_v6 = vadd.f32 %v336_v3, %v80_v35  ;;  %v79_v27 = vmul.f32 %v77_v61, %v72_v24 }
 0x7da   :  { %v337_v23 = vsel %vm324_vm14, %v335_v22, %v483_v30 }
 0x7db   :  { %340 = vst [vmem:[#allocation2] sm:$0xff] %v338_v6 }
 0x7dc   :  { %v58_v25 = vpop.permute.xlu0 %57 }
 0x7dd   :  { %v65_v29 = vmul.f32 %v63_v12, %v58_v25 }
 0x7df   :  { %v81_v34 = vadd.f32 %v79_v27, %v65_v29 }
 0x7e1   :  { %v339_v37 = vadd.f32 %v337_v23, %v81_v34 }
 0x7e3   :  { %341 = vst [vmem:[#allocation2 + $0x8] sm:$0xff] %v339_v37 }
 0x7e4   :  { %395 = shalt.err (!%p392_p4)
}
 0x7e5   :  { %s409_s12 = smov 128   ;;  %s410_s13 = smov 8  }
 0x7e6   :  { %353 = dma.vmem_to_hbm [thread:$0]  %s348_s10, 256, %s582_s6, [#allocation3], %s409_s12, %s409_s12, %s410_s13  }
 0x7e7   :  { %404 = dma.done.wait [#allocation3], 256  }
 0x7e8   :  { %405 = vsyncadd [#allocation3], 4294967040 }
 0x7e9   :  { %357 = vsyncpa [#allocation3], 1 }

</bundles_post_ra>
